<compile_context>
chip_gen: v7x
topology: tpu7x:2x2x1
jax: 0.10.0
libtpu: 0.0.40
codegen_flags: <defaults>
</compile_context>

<pallas_src>
import functools

import jax
import jax.numpy as jnp
from jax import lax
from jax.experimental import pallas as pl
from jax.experimental.pallas import tpu as pltpu

MARGIN = 0.5
_PW_EPS = 1e-6  # torch.nn.functional.pairwise_distance default eps


def _vmem_capacity_bytes():
    try:
        info = pltpu.get_tpu_info()
        cap = int(getattr(info, "vmem_capacity_bytes", 0) or 0)
        if cap > 0:
            return cap
    except Exception:
        pass
    return 64 * 1024 * 1024  # conservative default (v7x per-TC VMEM)


def _round_up(x, m):
    return -(-x // m) * m


def _contrastive_loss_kernel(anchor_ref, other_ref, labels_ref, out_ref, *,
                             n_rows, group, feat, margin, eps):
    """One row-tile: per-tile partial loss sum into a lane-dense (1,8,128) block."""
    i = pl.program_id(0)
    tn = anchor_ref.shape[0]

    a = anchor_ref[...].astype(jnp.float32)       # (tn, Dp)
    b = other_ref[...].astype(jnp.float32)        # (tn, Dp)
    y = labels_ref[...].astype(jnp.float32)       # (tn, group)

    diff = a - b + eps                            # torch adds eps elementwise before the norm
    sq = diff * diff

    if group == 1:
        d2 = jnp.sum(sq, axis=-1, keepdims=True)  # (tn, 1)
    else:
        # g original rows are packed along the lane axis; per-row sums are exact
        # f32 contiguous-lane-slice reductions (group <= 8, unrolled at trace time).
        d2 = jnp.concatenate(
            [jnp.sum(sq[:, k * feat:(k + 1) * feat], axis=-1, keepdims=True)
             for k in range(group)], axis=-1)     # (tn, group)

    d = jnp.sqrt(d2)
    hinge = jnp.maximum(margin - d, 0.0)
    losses = 0.5 * (y * d2 + (1.0 - y) * hinge * hinge)   # (tn, group)

    # Mask (packed) rows past the real batch size (last ragged tile reads padding).
    rows = i * tn + lax.broadcasted_iota(jnp.int32, losses.shape, 0)
    losses = jnp.where(rows < n_rows, losses, 0.0)

    # Partial sum for this tile, placed at [0,0,0] of a lane-dense block (zeros
    # elsewhere) -> full unmasked vector store, and the wrapper's dense jnp.sum over
    # all partial blocks is exact (adding zeros is exact).
    partial = jnp.sum(losses, keepdims=True)               # (1, 1)
    sub = lax.broadcasted_iota(jnp.int32, (1, 8, 128), 1)
    lane = lax.broadcasted_iota(jnp.int32, (1, 8, 128), 2)
    out_ref[...] = jnp.where(
        (sub == 0) & (lane == 0),
        jnp.broadcast_to(partial.reshape(1, 1, 1), (1, 8, 128)),
        0.0)


def contrastive_loss(rep_anchor, rep_other, labels, *, margin=MARGIN,
                     size_average=True):
    N, D = rep_anchor.shape
    itemsize = jnp.dtype(rep_anchor.dtype).itemsize
    if labels.dtype == jnp.bool_:
        labels = labels.astype(jnp.int32)
    lbl_itemsize = max(4, jnp.dtype(labels.dtype).itemsize)

    # ---- small-D lane folding (free contiguous reshape, no HBM copy) ----
    g = 1
    if 0 < D < 128 and 128 % D == 0:
        g = min(128 // D, 8)
        while g > 1 and N % g != 0:
            g //= 2
    M, Dp = N // g, g * D

    anchor = rep_anchor.reshape(M, Dp)
    other = rep_other.reshape(M, Dp)
    labels2d = labels.reshape(M, g)          # kept in original narrow dtype

    # ---- tile sizing: per-step DMA byte target with honest VMEM accounting ----
    vmem_cap = _vmem_capacity_bytes()
    vmem_budget = min(vmem_cap // 2, 48 * 1024 * 1024)
    target_step_bytes = 8 * 1024 * 1024      # >= ~8 MiB of input per grid step

    def rows_for(buffers):
        per_row = (2 * buffers * Dp * itemsize        # pipelined a/b input buffers
                   + buffers * 128 * lbl_itemsize     # label block (lane-padded to 128)
                   + 4 * Dp * 4)                      # in-kernel f32 temporaries
        return max(8, (vmem_budget // per_row) // 8 * 8)

    tn_target = max(8, _round_up(target_step_bytes // max(1, 2 * Dp * itemsize), 8))

    buffers = 2
    tn = min(rows_for(2), tn_target)
    if tn < 256 and tn < tn_target:
        # Huge-D case: VMEM caps the tile at a few hundred rows -> deepen the input
        # pipeline instead of shrinking further (hides exposed DMA issue latency).
        tn3 = min(rows_for(3), tn_target)
        if tn3 >= max(8, tn // 2):
            buffers, tn = 3, tn3

    # Guarantee >= 2 balanced tiles for non-tiny batches so the "parallel" grid axis
    # can shard across both v7x TensorCores (costs one ~0.35us step on v5e/v6e).
    if M >= 256:
        tn = min(tn, _round_up(-(-M // 2), 8))
    if tn >= M:
        tn = M
    num_tiles = -(-M // tn)

    tile_vmem = (2 * buffers * tn * Dp * itemsize
                 + buffers * tn * 128 * lbl_itemsize
                 + 4 * tn * Dp * 4
                 + 2 * 8 * 128 * 4)
    vmem_limit = int(min(vmem_cap - (8 << 20),
                         max(16 << 20, tile_vmem + (4 << 20))))

    kernel = functools.partial(_contrastive_loss_kernel,
                               n_rows=M, group=g, feat=D,
                               margin=float(margin), eps=_PW_EPS)

    bytes_accessed = int(2 * N * D * itemsize + N * lbl_itemsize
                         + num_tiles * 8 * 128 * 4)
    cost = pl.CostEstimate(flops=int(7 * N * D), transcendentals=int(N),
                           bytes_accessed=bytes_accessed)

    if buffers == 3:
        ab_spec = pl.BlockSpec((tn, Dp), lambda i: (i, 0),
                               pipeline_mode=pl.Buffered(3))
    else:
        ab_spec = pl.BlockSpec((tn, Dp), lambda i: (i, 0))
    lbl_spec = pl.BlockSpec((tn, g), lambda i: (i, 0))

    partials = pl.pallas_call(
        kernel,
        out_shape=jax.ShapeDtypeStruct((num_tiles, 8, 128), jnp.float32),
        grid_spec=pltpu.PrefetchScalarGridSpec(
            num_scalar_prefetch=0,
            grid=(num_tiles,),
            in_specs=[ab_spec, ab_spec, lbl_spec],
            out_specs=pl.BlockSpec((1, 8, 128), lambda i: (i, 0, 0)),
        ),
        compiler_params=pltpu.CompilerParams(
            # No carried accumulator -> grid axis is independent -> shards across
            # both TensorCores on v7x (no effect on single-TC v5e/v6e).
            dimension_semantics=("parallel",),
            vmem_limit_bytes=vmem_limit,
        ),
        cost_estimate=cost,
    )(anchor, other, labels2d)

    total = jnp.sum(partials)   # dense reduce; non-[0,0] entries are exact zeros
    return total / N if size_average else total


def _reference(rep_anchor, rep_other, labels, size_average=True):
    # Pure-JAX reference mirroring the PyTorch forward.
    diff = rep_anchor.astype(jnp.float32) - rep_other.astype(jnp.float32) + _PW_EPS
    d = jnp.sqrt(jnp.sum(diff * diff, axis=-1))
    y = labels.astype(jnp.float32)
    losses = 0.5 * (y * d**2 + (1.0 - y) * jnp.maximum(MARGIN - d, 0.0) ** 2)
    return losses.mean() if size_average else losses.sum()


if __name__ == "__main__":
    key = jax.random.PRNGKey(0)
    k1, k2, k3 = jax.random.split(key, 3)

    # Small batch of sentence-embedding pairs (exercises D=32 -> 4x lane fold).
    N, D = 8, 32
    rep_anchor = jax.random.normal(k1, (N, D), dtype=jnp.float32)
    rep_other = jax.random.normal(k2, (N, D), dtype=jnp.float32)
    labels = jax.random.bernoulli(k3, 0.5, (N,)).astype(jnp.int32)

    out = jax.block_until_ready(contrastive_loss(rep_anchor, rep_other, labels))
    ref = _reference(rep_anchor, rep_other, labels)
    assert jnp.allclose(out, ref, rtol=1e-5, atol=1e-6), (out, ref)

    # Multi-tile (2 balanced tiles) + ragged-tail + unfolded (D=128) path.
    kb1, kb2, kb3 = jax.random.split(jax.random.PRNGKey(1), 3)
    N2, D2 = 1000, 128
    a2 = jax.random.normal(kb1, (N2, D2), dtype=jnp.float32)
    b2 = jax.random.normal(kb2, (N2, D2), dtype=jnp.float32)
    y2 = jax.random.bernoulli(kb3, 0.5, (N2,)).astype(jnp.int32)
    out2 = jax.block_until_ready(contrastive_loss(a2, b2, y2))
    ref2 = _reference(a2, b2, y2)
    assert jnp.allclose(out2, ref2, rtol=1e-5, atol=1e-6), (out2, ref2)

    # bf16 inputs (in-kernel upcast), 2x fold (D=64), size_average=False.
    kc1, kc2, kc3 = jax.random.split(jax.random.PRNGKey(2), 3)
    N3, D3 = 12, 64
    a3 = jax.random.normal(kc1, (N3, D3), dtype=jnp.bfloat16)
    b3 = jax.random.normal(kc2, (N3, D3), dtype=jnp.bfloat16)
    y3 = jax.random.bernoulli(kc3, 0.5, (N3,)).astype(jnp.int32)
    out3 = jax.block_until_ready(contrastive_loss(a3, b3, y3, size_average=False))
    ref3 = _reference(a3, b3, y3, size_average=False)
    assert jnp.allclose(out3, ref3, rtol=1e-4, atol=1e-4), (out3, ref3)

    print("KERNEL_OK")
</pallas_src>

<mosaic_0001>
module attributes {stable_mosaic.version = 11 : i64} {
  func.func @_contrastive_loss_kernel(%arg0: i32, %arg1: memref<2x128xf32, #tpu.memory_space<vmem>>, %arg2: memref<2x128xf32, #tpu.memory_space<vmem>>, %arg3: memref<2x4xi32, #tpu.memory_space<vmem>>, %arg4: memref<1x8x128xf32, #tpu.memory_space<vmem>>) attributes {dimension_semantics = [#tpu.dimension_semantics<parallel>], iteration_bounds = array<i64: 1>, scalar_prefetch = 0 : i64, scratch_operands = 0 : i64, tpu.core_type = #tpu.core_type<tc>, window_params = [{transform_indices = @transform_0, window_bounds = array<i64: 2, 128>}, {transform_indices = @transform_1, window_bounds = array<i64: 2, 128>}, {transform_indices = @transform_2, window_bounds = array<i64: 2, 4>}, {transform_indices = @transform_3, window_bounds = array<i64: 1, 8, 128>}]} {
    %c0 = arith.constant 0 : index
    %c0_0 = arith.constant 0 : index
    %0 = vector.load %arg1[%c0, %c0_0] : memref<2x128xf32, #tpu.memory_space<vmem>>, vector<2x128xf32>
    %c0_1 = arith.constant 0 : index
    %c0_2 = arith.constant 0 : index
    %1 = vector.load %arg2[%c0_1, %c0_2] : memref<2x128xf32, #tpu.memory_space<vmem>>, vector<2x128xf32>
    %c0_3 = arith.constant 0 : index
    %c0_4 = arith.constant 0 : index
    %2 = vector.load %arg3[%c0_3, %c0_4] : memref<2x4xi32, #tpu.memory_space<vmem>>, vector<2x4xi32>
    %3 = arith.sitofp %2 : vector<2x4xi32> to vector<2x4xf32>
    %4 = arith.subf %0, %1 : vector<2x128xf32>
    %cst = arith.constant 9.99999997E-7 : f32
    %5 = vector.broadcast %cst : f32 to vector<2x128xf32>
    %6 = arith.addf %4, %5 : vector<2x128xf32>
    %7 = arith.mulf %6, %6 : vector<2x128xf32>
    %8 = vector.extract_strided_slice %7 {offsets = [0, 0], sizes = [2, 32], strides = [1, 1]} : vector<2x128xf32> to vector<2x32xf32>
    %cst_5 = arith.constant dense<0.000000e+00> : vector<2xf32>
    %9 = vector.multi_reduction <add>, %8, %cst_5 [1] : vector<2x32xf32> to vector<2xf32>
    %10 = vector.shape_cast %9 : vector<2xf32> to vector<2x1xf32>
    %11 = vector.extract_strided_slice %7 {offsets = [0, 32], sizes = [2, 32], strides = [1, 1]} : vector<2x128xf32> to vector<2x32xf32>
    %cst_6 = arith.constant dense<0.000000e+00> : vector<2xf32>
    %12 = vector.multi_reduction <add>, %11, %cst_6 [1] : vector<2x32xf32> to vector<2xf32>
    %13 = vector.shape_cast %12 : vector<2xf32> to vector<2x1xf32>
    %14 = vector.extract_strided_slice %7 {offsets = [0, 64], sizes = [2, 32], strides = [1, 1]} : vector<2x128xf32> to vector<2x32xf32>
    %cst_7 = arith.constant dense<0.000000e+00> : vector<2xf32>
    %15 = vector.multi_reduction <add>, %14, %cst_7 [1] : vector<2x32xf32> to vector<2xf32>
    %16 = vector.shape_cast %15 : vector<2xf32> to vector<2x1xf32>
    %17 = vector.extract_strided_slice %7 {offsets = [0, 96], sizes = [2, 32], strides = [1, 1]} : vector<2x128xf32> to vector<2x32xf32>
    %cst_8 = arith.constant dense<0.000000e+00> : vector<2xf32>
    %18 = vector.multi_reduction <add>, %17, %cst_8 [1] : vector<2x32xf32> to vector<2xf32>
    %19 = vector.shape_cast %18 : vector<2xf32> to vector<2x1xf32>
    %20 = tpu.concatenate %10, %13, %16, %19 in 1 : vector<2x1xf32>, vector<2x1xf32>, vector<2x1xf32>, vector<2x1xf32> -> vector<2x4xf32>
    %21 = math.sqrt %20 : vector<2x4xf32>
    %cst_9 = arith.constant 5.000000e-01 : f32
    %22 = vector.broadcast %cst_9 : f32 to vector<2x4xf32>
    %23 = arith.subf %22, %21 : vector<2x4xf32>
    %cst_10 = arith.constant 0.000000e+00 : f32
    %24 = vector.broadcast %cst_10 : f32 to vector<2x4xf32>
    %25 = arith.maximumf %23, %24 : vector<2x4xf32>
    %26 = arith.mulf %3, %20 : vector<2x4xf32>
    %cst_11 = arith.constant 1.000000e+00 : f32
    %27 = vector.broadcast %cst_11 : f32 to vector<2x4xf32>
    %28 = arith.subf %27, %3 : vector<2x4xf32>
    %29 = arith.mulf %28, %25 : vector<2x4xf32>
    %30 = arith.mulf %29, %25 : vector<2x4xf32>
    %31 = arith.addf %26, %30 : vector<2x4xf32>
    %cst_12 = arith.constant 5.000000e-01 : f32
    %32 = vector.broadcast %cst_12 : f32 to vector<2x4xf32>
    %33 = arith.mulf %32, %31 : vector<2x4xf32>
    %c2_i32 = arith.constant 2 : i32
    %34 = arith.muli %arg0, %c2_i32 : i32
    %35 = tpu.iota {dimensions = array<i32: 0>} : vector<2x4xi32>
    %36 = vector.broadcast %34 : i32 to vector<2x4xi32>
    %37 = arith.addi %36, %35 : vector<2x4xi32>
    %c2_i32_13 = arith.constant 2 : i32
    %38 = vector.broadcast %c2_i32_13 : i32 to vector<2x4xi32>
    %39 = arith.cmpi slt, %37, %38 : vector<2x4xi32>
    %cst_14 = arith.constant 0.000000e+00 : f32
    %40 = vector.broadcast %cst_14 : f32 to vector<2x4xf32>
    %41 = arith.select %39, %33, %40 : vector<2x4xi1>, vector<2x4xf32>
    %42 = vector.shape_cast %41 : vector<2x4xf32> to vector<1x2x4xf32>
    %cst_15 = arith.constant dense<0.000000e+00> : vector<1xf32>
    %43 = vector.multi_reduction <add>, %42, %cst_15 [1, 2] : vector<1x2x4xf32> to vector<1xf32>
    %44 = vector.shape_cast %43 : vector<1xf32> to vector<1x1x1xf32>
    %45 = vector.extract %44[0, 0, 0] : f32 from vector<1x1x1xf32>
    %46 = vector.broadcast %45 : f32 to vector<1x1xf32>
    %47 = tpu.iota {dimensions = array<i32: 1>} : vector<1x8x128xi32>
    %48 = tpu.iota {dimensions = array<i32: 2>} : vector<1x8x128xi32>
    %c0_i32 = arith.constant 0 : i32
    %49 = vector.broadcast %c0_i32 : i32 to vector<1x8x128xi32>
    %50 = arith.cmpi eq, %47, %49 : vector<1x8x128xi32>
    %c0_i32_16 = arith.constant 0 : i32
    %51 = vector.broadcast %c0_i32_16 : i32 to vector<1x8x128xi32>
    %52 = arith.cmpi eq, %48, %51 : vector<1x8x128xi32>
    %53 = arith.andi %50, %52 : vector<1x8x128xi1>
    %54 = vector.shape_cast %46 : vector<1x1xf32> to vector<1x1x1xf32>
    %55 = vector.shape_cast %54 : vector<1x1x1xf32> to vector<1x1x1xf32>
    %56 = vector.broadcast %55 : vector<1x1x1xf32> to vector<1x8x128xf32>
    %cst_17 = arith.constant 0.000000e+00 : f32
    %57 = vector.broadcast %cst_17 : f32 to vector<1x8x128xf32>
    %58 = arith.select %53, %56, %57 : vector<1x8x128xi1>, vector<1x8x128xf32>
    %c0_18 = arith.constant 0 : index
    %c0_19 = arith.constant 0 : index
    %c0_20 = arith.constant 0 : index
    %59 = vector.load %arg4[%c0_18, %c0_19, %c0_20] : memref<1x8x128xf32, #tpu.memory_space<vmem>>, vector<1x8x128xf32>
    tpu.vector_store %arg4[%c0_18, %c0_19, %c0_20], %58 {strides = array<i32>} : memref<1x8x128xf32, #tpu.memory_space<vmem>>, vector<1x8x128xf32>,
    return
  }
  func.func @transform_0(%arg0: i32) -> (i32, i32) {
    %c0_i32 = arith.constant 0 : i32
    %c0_i32_0 = arith.constant 0 : i32
    return %arg0, %c0_i32 : i32, i32
  }
  func.func @transform_1(%arg0: i32) -> (i32, i32) {
    %c0_i32 = arith.constant 0 : i32
    %c0_i32_0 = arith.constant 0 : i32
    return %arg0, %c0_i32 : i32, i32
  }
  func.func @transform_2(%arg0: i32) -> (i32, i32) {
    %c0_i32 = arith.constant 0 : i32
    %c0_i32_0 = arith.constant 0 : i32
    return %arg0, %c0_i32 : i32, i32
  }
  func.func @transform_3(%arg0: i32) -> (i32, i32, i32) {
    %c0_i32 = arith.constant 0 : i32
    %c0_i32_0 = arith.constant 0 : i32
    %c0_i32_1 = arith.constant 0 : i32
    return %arg0, %c0_i32, %c0_i32_0 : i32, i32, i32
  }
}

</mosaic_0001>

<bundles_post_ra>
// kernel: tpu_custom_call.1
= control target key start
LH: loop header
LB: loop body
LE: loop exit
PB: predicated region body
PF: predicated region fallthrough
CT: control target
= control target key end

     0   :  { %8 = vsyncpa [#allocation3], 0  ;;  %s231_s0 = inlined_call_operand.hbm [shape: f32[2,128], index: 0, kind: input, shape index: {}]   ;;  %s232_s1 = inlined_call_operand.vmem [shape: f32[2,128], index: 1, kind: input, shape index: {}]   ;;  %s233_s2 = inlined_call_operand.vmem [shape: s32[2,4], index: 2, kind: input, shape index: {}]   ;;  %s234_s3 = inlined_call_operand.hbm [shape: f32[1,8,128], index: 3, kind: output, shape index: {}]  }
   0x1   :  { %9 = vsyncpa [#allocation4], 0  ;;  %s176_s12 = smov [#allocation2]   ;;  %s128_s16 = scalar_lea.hbm %s231_s0, 32 }
   0x2   :  { %s16_s13 = sshll.u32 %s176_s12, 4  ;;  %p129_p0 = scmp.ne.s32.totalorder %s231_s0, %s128_s16  ;;  %s17_s13 = int_to_ptr.vmem [resolvable:$true] %s16_s13 }
   0x3   :  { %p132_p1 = scmp.lt.u32.totalorder %s128_s16, %s231_s0 }
   0x5   :  { %p134_p2 = pnand %p132_p1, %p129_p0 }
   0x7   :  { %137 = shalt.err (!%p134_p2)
}
   0x8   :  { %s138_s21 = scalar_lea.vmem %s17_s13, 32  ;;  %p143_p4 = scmp.lt.s32.totalorder %s17_s13, %s17_s13 }
   0x9   :  { %p139_p3 = scmp.ne.s32.totalorder %s17_s13, %s138_s21  ;;  %p144_p5 = scmp.lt.s32.totalorder %s138_s21, %s138_s21 }
   0xb   :  { %p145_p6 = por %p144_p5, %p143_p4 }
   0xd   :  { %p146_p7 = pnand %p145_p6, %p139_p3 }
   0xf   :  { %149 = shalt.err (!%p146_p7)
}
  0x10   :  { %19 = dma.hbm_to_vmem [thread:$0]  %s231_s0, 32, %s17_s13, [#allocation3]  }
  0x11   :  { %172 = dma.done.wait [#allocation3], 32  }
  0x12   :  { %173 = vsyncadd [#allocation3], 4294967264  ;;  %v27_v0 = vld [vmem:[#allocation2] sm:$0x3]  ;;  %s177_s26 = smov 96   ;;  %s178_s27 = smov 32   ;;  %v79_v28 = vlaneseq }
  0x13   :  { %v28_v1 = vld [vmem:[%s232_s1] sm:$0x3]  ;;  %s179_s28 = smov 64   ;;  %vm34_vm0 = vcmask 254976   ;;  %vm57_vm1 = vcmask 7168   ;;  %vm59_vm2 = vcmask 15360  }
  0x14   :  { %v31_v2 = vsub.f32 %v27_v0, %v28_v1  ;;  %vm61_vm3 = vcmask 23552   ;;  %v29_v20 = vld [vmem:[%s233_s2] sm:$0x3]  ;;  %v80_v31 = vshrl.u32 %v79_v28, 7  ;;  %vm85_vm7 = vcmask 25600   ;;  %s180_s2 = smov [#allocation5]  }
  0x15   :  { %v30_v23 = vcvt.s32.f32 %v29_v20  ;;  %v97_v45 = vand.u32 127, %v79_v28  ;;  %s110_s29 = sshll.u32 %s180_s2, 4  ;;  %s111_s29 = int_to_ptr.vmem [resolvable:$true] %s110_s29 }
  0x16   :  { %v32_v3 = vadd.f32 1e-06, %v31_v2  ;;  %vm83_vm6 = vcmp.lt.s32.totalorder %v80_v31, 2  ;;  %vm98_vm8 = vcmp.eq.s32.totalorder %v80_v31, 0  ;;  %s150_s4 = scalar_lea.vmem %s111_s29, 128  ;;  %p155_p9 = scmp.lt.s32.totalorder %s111_s29, %s111_s29 }
  0x17   :  { %v73_v27 = vsub.f32 1.0, %v30_v23  ;;  %vm99_vm9 = vcmp.eq.s32.totalorder %v97_v45, 0  ;;  %p151_p8 = scmp.ne.s32.totalorder %s111_s29, %s150_s4  ;;  %p156_p10 = scmp.lt.s32.totalorder %s150_s4, %s150_s4 }
  0x18   :  { %v33_v4 = vmul.f32 %v32_v3, %v32_v3  ;;  %vm100_vm10 = vmand %vm98_vm8, %vm99_vm9 }
  0x19   :  { %p157_p11 = por %p156_p10, %p155_p9 }
  0x1a   :  { %39 = vrot.lane.b32.xlu0 %v33_v4, %s177_s26  ;;  %51 = vrot.lane.b32.xlu1 %v33_v4, %s178_s27  ;;  %v35_v5 = vsel %vm34_vm0, %v33_v4, 0.0 }
  0x1b   :  { %p158_p12 = pnand %p157_p11, %p151_p8 }
  0x1e   :  { %45 = vrot.lane.b32.xlu0 %v33_v4, %s179_s28 }
  0x3e   :  { %36 = vadd.xlane.f32.xlu1 %v35_v5 }
  0x8c   :  { %v40_v6 = vpop.permute.xlu0 %39  ;;  %v52_v7 = vpop.permute.xlu1 %51 }
  0x8d   :  { %v42_v8 = vsel %vm34_vm0, %v40_v6, 0.0  ;;  %v54_v9 = vsel %vm34_vm0, %v52_v7, 0.0 }
  0x8e   :  { %43 = vadd.xlane.f32.xlu0 %v42_v8  ;;  %55 = vadd.xlane.f32.xlu1 %v54_v9 }
  0x90   :  { %v46_v10 = vpop.permute.xlu0 %45 }
  0x91   :  { %v48_v11 = vsel %vm34_vm0, %v46_v10, 0.0 }
  0x92   :  { %49 = vadd.xlane.f32.xlu0 %v48_v11 }
  0xcb   :  { %v37_v12 = vpop.xlane.xlu1 %36 }
 0x11b   :  { %v44_v13 = vpop.xlane.xlu0 %43  ;;  %v56_v14 = vpop.xlane.xlu1 %55 }
 0x11c   :  { %v58_v15 = vsel %vm57_vm1, %v37_v12, %v44_v13 }
 0x11f   :  { %v50_v16 = vpop.xlane.xlu0 %49 }
 0x120   :  { %v60_v17 = vsel %vm59_vm2, %v58_v15, %v50_v16 }
 0x121   :  { %v62_v18 = vsel %vm61_vm3, %v60_v17, %v56_v14 }
 0x122   :  { %126 = vrsqrt.f32 %v62_v18  ;;  %vm65_vm4 = vcmp.eq.f32.partialorder %v62_v18, inf  ;;  %v68_v22 = vand.u32 2147483648, %v62_v18  ;;  %vm67_vm5 = vcmp.eq.f32.partialorder %v62_v18, 0.0 }
 0x123   :  { %v72_v32 = vmul.f32 %v62_v18, %v30_v23 }
 0x12c   :  { %v127_v19 = vpop.eup %126 }
 0x12d   :  { %v64_v21 = vmul.f32 %v127_v19, %v62_v18 }
 0x12f   :  { %v66_v24 = vsel %vm65_vm4, %v62_v18, %v64_v21 }
 0x130   :  { %v69_v25 = vsel %vm67_vm5, %v68_v22, %v66_v24 }
 0x131   :  { %v70_v26 = vsub.f32 0.5, %v69_v25 }
 0x133   :  { %v71_v29 = vmax.f32 %v70_v26, 0.0 }
 0x135   :  { %v74_v30 = vmul.f32 %v73_v27, %v71_v29 }
 0x137   :  { %v75_v33 = vmul.f32 %v74_v30, %v71_v29 }
 0x139   :  { %v76_v34 = vadd.f32 %v75_v33, %v72_v32 }
 0x13b   :  { %v77_v35 = vmul.f32 0.5, %v76_v34 }
 0x13d   :  { %v84_v36 = vsel %vm83_vm6, %v77_v35, 0.0 }
 0x13e   :  { %v86_v37 = vsel %vm85_vm7, %v84_v36, 0.0 }
 0x13f   :  { %87 = vadd.xlane.f32.xlu0 %v86_v37 }
 0x1cc   :  { %v88_v38 = vpop.xlane.xlu0 %87 }
 0x1cd   :  { %v89_v39 = vrot.slane %v88_v38, 4 }
 0x1cf   :  { %v90_v40 = vadd.f32 %v89_v39, %v88_v38 }
 0x1d1   :  { %v91_v41 = vrot.slane %v90_v40, 2 }
 0x1d3   :  { %v92_v42 = vadd.f32 %v91_v41, %v90_v40 }
 0x1d5   :  { %v93_v43 = vrot.slane %v92_v42, 1 }
 0x1d7   :  { %v94_v44 = vadd.f32 %v93_v43, %v92_v42 }
 0x1d9   :  { %119 = vpush %v94_v44 }
 0x20a   :  { %s120_s30 = spop %119 }
 0x20b   :  { %v101_v46 = vstv %s120_s30 }
 0x20c   :  { %v102_v47 = vsel %vm100_vm10, %v101_v46, 0.0 }
 0x20d   :  { %103 = vst [vmem:[#allocation5] sm:$0xff] %v102_v47 }
 0x20e   :  { %161 = shalt.err (!%p158_p12)
}
 0x20f   :  { %s162_s7 = scalar_lea.hbm %s234_s3, 128 }
 0x210   :  { %p163_p13 = scmp.ne.s32.totalorder %s234_s3, %s162_s7  ;;  %p166_p0 = scmp.lt.u32.totalorder %s162_s7, %s234_s3 }
 0x212   :  { %p168_p1 = pnand %p166_p0, %p163_p13 }
 0x214   :  { %171 = shalt.err (!%p168_p1)
}
 0x215   :  { %113 = dma.vmem_to_hbm [thread:$0]  %s111_s29, 128, %s234_s3, [#allocation4]  }
 0x216   :  { %174 = dma.done.wait [#allocation4], 128  }
 0x217   :  { %175 = vsyncadd [#allocation4], 4294967168 }
 0x218   :  { %117 = vsyncpa [#allocation3], 1 }
 0x219   :  { %118 = vsyncpa [#allocation4], 1 }

</bundles_post_ra>
